<compile_context>
chip_gen: v7x
topology: tpu7x:2x2x1
jax: 0.10.0
libtpu: 0.0.40
codegen_flags: <defaults>
</compile_context>

<pallas_src>
import functools

import jax
import jax.numpy as jnp
from jax import lax
from jax.experimental import pallas as pl
from jax.experimental.pallas import tpu as pltpu

# Leave headroom under v7x's 64 MiB / TensorCore VMEM (v5e/v6e have 128 MiB).
_VMEM_LIMIT_BYTES = 48 * 1024 * 1024


# ----------------------------------------------------------------------------
# Tiled linear kernels (MXU matmul with f32 accumulator scratch)
# ----------------------------------------------------------------------------
def _linear_kernel(x_ref, w_ref, o_ref, acc_ref):
    @pl.when(pl.program_id(2) == 0)
    def _():
        acc_ref[...] = jnp.zeros_like(acc_ref)

    acc_ref[...] += jnp.dot(
        x_ref[...], w_ref[...], preferred_element_type=jnp.float32
    )

    @pl.when(pl.program_id(2) == pl.num_programs(2) - 1)
    def _():
        o_ref[...] = acc_ref[...].astype(o_ref.dtype)


def _linear_bias_kernel(x_ref, w_ref, b_ref, o_ref, acc_ref):
    @pl.when(pl.program_id(2) == 0)
    def _():
        acc_ref[...] = jnp.zeros_like(acc_ref)

    acc_ref[...] += jnp.dot(
        x_ref[...], w_ref[...], preferred_element_type=jnp.float32
    )

    @pl.when(pl.program_id(2) == pl.num_programs(2) - 1)
    def _():
        o_ref[...] = (
            acc_ref[...] + b_ref[...].astype(jnp.float32)
        ).astype(o_ref.dtype)


def pallas_linear(x2d, w, b=None, *, tm=256, tn=256, tk=512):
    """x2d: (M, K) @ w: (K, N) [+ b: (N,)] -> (M, N), tiled over (M, N, K)."""
    M, K = x2d.shape
    K2, N = w.shape
    assert K == K2
    tm = min(tm, M)
    tn = min(tn, N)
    tk = min(tk, K)
    # The K (reduction) axis must tile exactly: padded garbage in a partial
    # K-edge block would be accumulated.  M / N edge blocks are fine (padded
    # reads produce rows/cols that are dropped on writeback).
    if K % tk != 0:
        tk = K  # TODO(synk): pick a proper divisor of K for large ragged K.
    grid = (pl.cdiv(M, tm), pl.cdiv(N, tn), K // tk)

    x_spec = pl.BlockSpec((tm, tk), lambda i, j, k: (i, k))
    w_spec = pl.BlockSpec((tk, tn), lambda i, j, k: (k, j))
    o_spec = pl.BlockSpec((tm, tn), lambda i, j, k: (i, j))
    scratch = [pltpu.VMEM((tm, tn), jnp.float32)]
    cparams = pltpu.CompilerParams(
        dimension_semantics=("parallel", "parallel", "arbitrary"),
        vmem_limit_bytes=_VMEM_LIMIT_BYTES,
    )
    out_shape = jax.ShapeDtypeStruct((M, N), x2d.dtype)

    if b is None:
        return pl.pallas_call(
            _linear_kernel,
            out_shape=out_shape,
            grid=grid,
            in_specs=[x_spec, w_spec],
            out_specs=o_spec,
            scratch_shapes=scratch,
            compiler_params=cparams,
        )(x2d, w)

    b2d = b.reshape(1, N)
    b_spec = pl.BlockSpec((1, tn), lambda i, j, k: (0, j))
    return pl.pallas_call(
        _linear_bias_kernel,
        out_shape=out_shape,
        grid=grid,
        in_specs=[x_spec, w_spec, b_spec],
        out_specs=o_spec,
        scratch_shapes=scratch,
        compiler_params=cparams,
    )(x2d, w, b2d)


# ----------------------------------------------------------------------------
# Attention core kernel: one (batch, q-tile) slab per grid step, all heads.
# ----------------------------------------------------------------------------
def _attention_kernel(q_ref, k_ref, v_ref, o_ref, *, scale, heads, dim_head):
    # q_ref: (TQ, H*Dh)   k_ref / v_ref: (N, H*Dh)   o_ref: (TQ, H*Dh)
    q = q_ref[...]
    k = k_ref[...]
    v = v_ref[...]
    head_outs = []
    for h in range(heads):  # static unroll; heads addressed by lane offsets
        lo = h * dim_head
        hi = lo + dim_head
        qh = q[:, lo:hi]
        kh = k[:, lo:hi]
        vh = v[:, lo:hi]
        # s = (q_h @ k_h^T) * scale without materializing a transposed copy.
        s = lax.dot_general(
            qh, kh, (((1,), (1,)), ((), ())),
            preferred_element_type=jnp.float32,
        ) * scale
        # numerically stable softmax in f32; denominator via EUP reciprocal
        m = jnp.max(s, axis=-1, keepdims=True)
        p = jnp.exp(s - m)
        p = p * pl.reciprocal(jnp.sum(p, axis=-1, keepdims=True), approx=True)
        oh = jnp.dot(
            p.astype(vh.dtype), vh, preferred_element_type=jnp.float32
        )
        head_outs.append(oh.astype(o_ref.dtype))
    # single lane-dense (TQ, H*Dh) store
    o_ref[...] = jnp.concatenate(head_outs, axis=-1)


def pallas_attention_core(qkv, scale, heads, dim_head, *, tq=256):
    """qkv: (B, N, 3*inner) with lanes laid out as [q | k | v].

    Returns the attention output in (B, N, inner) layout (heads concatenated
    along lanes), ready for the output projection with no rearrange.
    """
    B, N, three_inner = qkv.shape
    inner = heads * dim_head
    assert three_inner == 3 * inner
    # NOTE: assumes inner is a multiple of 128 (e.g. Dh=64, H>=2) so the lane
    # blocks below satisfy the (8, 128) tiling constraint.
    tq = min(tq, N)
    grid = (B, pl.cdiv(N, tq))

    # q/k/v are read straight out of the fused qkv activation via lane-block
    # index maps (block 0 = q, 1 = k, 2 = v) -> no XLA split / transpose.
    q_spec = pl.BlockSpec((None, tq, inner), lambda b, i: (b, i, 0))
    k_spec = pl.BlockSpec((None, N, inner), lambda b, i: (b, 0, 1))
    v_spec = pl.BlockSpec((None, N, inner), lambda b, i: (b, 0, 2))
    o_spec = pl.BlockSpec((None, tq, inner), lambda b, i: (b, i, 0))

    kernel = functools.partial(
        _attention_kernel, scale=scale, heads=heads, dim_head=dim_head
    )
    # TODO(synk): for long sequences (N >= ~2k) add a flash-style KV-tiled
    # inner axis (online softmax with m/l/acc scratch) to stay under v7x VMEM.
    return pl.pallas_call(
        kernel,
        out_shape=jax.ShapeDtypeStruct((B, N, inner), qkv.dtype),
        grid=grid,
        in_specs=[q_spec, k_spec, v_spec],
        out_specs=o_spec,
        compiler_params=pltpu.CompilerParams(
            dimension_semantics=("parallel", "parallel"),
            vmem_limit_bytes=_VMEM_LIMIT_BYTES,
        ),
    )(qkv, qkv, qkv)


# ----------------------------------------------------------------------------
# Attention module (parameters + forward), mirroring the PyTorch module.
# ----------------------------------------------------------------------------
def init_attention_params(key, dim, heads=8, dim_head=64, dtype=jnp.float32):
    inner_dim = dim_head * heads
    k1, k2, k3 = jax.random.split(key, 3)
    # PyTorch nn.Linear default init: U(-1/sqrt(fan_in), 1/sqrt(fan_in))
    lim_qkv = 1.0 / (dim ** 0.5)
    lim_out = 1.0 / (inner_dim ** 0.5)
    # stored pre-transposed: (in_features, out_features)
    w_qkv = jax.random.uniform(k1, (dim, inner_dim * 3), dtype, -lim_qkv, lim_qkv)
    w_out = jax.random.uniform(k2, (inner_dim, dim), dtype, -lim_out, lim_out)
    b_out = jax.random.uniform(k3, (dim,), dtype, -lim_out, lim_out)
    return {
        "w_qkv": w_qkv,
        "w_out": w_out,
        "b_out": b_out,
        "heads": heads,
        "dim_head": dim_head,
        "scale": dim_head ** (-0.5),
        "project_out": not (heads == 1 and dim_head == dim),
    }


def attention_forward(params, x):
    """x: (B, N, D) -> (B, N, D)."""
    B, N, D = x.shape
    H = params["heads"]
    Dh = params["dim_head"]
    inner = H * Dh

    # 1) fused qkv projection (tiled Pallas matmul); output lanes = [q|k|v]
    qkv = pallas_linear(x.reshape(B * N, D), params["w_qkv"])   # (B*N, 3*inner)
    qkv = qkv.reshape(B, N, 3 * inner)                          # free reshape

    # 2) attention core: heads live in lane offsets, no transposes needed
    out = pallas_attention_core(qkv, params["scale"], H, Dh)    # (B, N, inner)

    # 3) output projection (tiled Pallas matmul + bias)
    if params["project_out"]:
        out = pallas_linear(
            out.reshape(B * N, inner), params["w_out"], params["b_out"]
        ).reshape(B, N, D)
    return out


# ----------------------------------------------------------------------------
def _reference_forward(params, x):
    """Pure-JAX reference for sanity checking."""
    B, N, D = x.shape
    H, Dh = params["heads"], params["dim_head"]
    inner = H * Dh
    qkv = x @ params["w_qkv"]
    q, k, v = jnp.split(qkv, 3, axis=-1)
    q = q.reshape(B, N, H, Dh).transpose(0, 2, 1, 3)
    k = k.reshape(B, N, H, Dh).transpose(0, 2, 1, 3)
    v = v.reshape(B, N, H, Dh).transpose(0, 2, 1, 3)
    s = jnp.einsum("bhqd,bhkd->bhqk", q, k) * params["scale"]
    p = jax.nn.softmax(s, axis=-1)
    o = jnp.einsum("bhqk,bhkd->bhqd", p, v)
    o = o.transpose(0, 2, 1, 3).reshape(B, N, inner)
    if params["project_out"]:
        o = o @ params["w_out"] + params["b_out"]
    return o


if __name__ == "__main__":
    key = jax.random.PRNGKey(0)
    k_param, k_x = jax.random.split(key)

    # Small shapes consistent with the module: dim=32, heads=8, dim_head=64
    B, N, D = 2, 8, 32
    params = init_attention_params(k_param, dim=D, heads=8, dim_head=64)
    x = jax.random.normal(k_x, (B, N, D), dtype=jnp.float32)

    out = attention_forward(params, x)
    out = jax.block_until_ready(out)

    ref = _reference_forward(params, x)
    assert out.shape == (B, N, D), out.shape
    # Tolerance accounts for the EUP approx reciprocal in the softmax denom.
    assert jnp.allclose(out, ref, atol=1e-2, rtol=1e-2), "mismatch vs reference"

    print("KERNEL_OK")
</pallas_src>

<mosaic_0001>
module attributes {stable_mosaic.version = 11 : i64} {
  func.func @_linear_kernel(%arg0: i32, %arg1: i32, %arg2: i32, %arg3: memref<16x32xf32, #tpu.memory_space<vmem>>, %arg4: memref<32x256xf32, #tpu.memory_space<vmem>>, %arg5: memref<16x256xf32, #tpu.memory_space<vmem>>, %arg6: memref<16x256xf32, #tpu.memory_space<vmem>>) attributes {dimension_semantics = [#tpu.dimension_semantics<parallel>, #tpu.dimension_semantics<parallel>, #tpu.dimension_semantics<arbitrary>], iteration_bounds = array<i64: 1, 6, 1>, scalar_prefetch = 0 : i64, scratch_operands = 1 : i64, tpu.core_type = #tpu.core_type<tc>, window_params = [{transform_indices = @transform_0, window_bounds = array<i64: 16, 32>}, {transform_indices = @transform_1, window_bounds = array<i64: 32, 256>}, {transform_indices = @transform_2, window_bounds = array<i64: 16, 256>}]} {
    %c0_i32 = arith.constant 0 : i32
    %0 = arith.cmpi eq, %arg2, %c0_i32 : i32
    %1 = arith.extui %0 : i1 to i32
    %c0_i32_0 = arith.constant 0 : i32
    %2 = arith.cmpi ne, %1, %c0_i32_0 : i32
    scf.if %2 {
      %cst_10 = arith.constant 0.000000e+00 : f32
      %12 = vector.broadcast %cst_10 : f32 to vector<16x256xf32>
      %c0_11 = arith.constant 0 : index
      %c0_12 = arith.constant 0 : index
      %13 = vector.load %arg6[%c0_11, %c0_12] : memref<16x256xf32, #tpu.memory_space<vmem>>, vector<16x256xf32>
      tpu.vector_store %arg6[%c0_11, %c0_12], %12 {strides = array<i32>} : memref<16x256xf32, #tpu.memory_space<vmem>>, vector<16x256xf32>,
    } else {
    }
    %c0 = arith.constant 0 : index
    %c0_1 = arith.constant 0 : index
    %3 = vector.load %arg6[%c0, %c0_1] : memref<16x256xf32, #tpu.memory_space<vmem>>, vector<16x256xf32>
    %c0_2 = arith.constant 0 : index
    %c0_3 = arith.constant 0 : index
    %4 = vector.load %arg3[%c0_2, %c0_3] : memref<16x32xf32, #tpu.memory_space<vmem>>, vector<16x32xf32>
    %c0_4 = arith.constant 0 : index
    %c0_5 = arith.constant 0 : index
    %5 = vector.load %arg4[%c0_4, %c0_5] : memref<32x256xf32, #tpu.memory_space<vmem>>, vector<32x256xf32>
    %cst = arith.constant dense<0.000000e+00> : vector<16x256xf32>
    %6 = tpu.matmul %4, %5, %cst {dimension_numbers = #tpu.dot_dimension_numbers<[1], [0], [0], [1], [0, 0, 1, 1], [], []>} : vector<16x32xf32>, vector<32x256xf32>, vector<16x256xf32> -> vector<16x256xf32>
    %7 = arith.addf %3, %6 : vector<16x256xf32>
    %c0_6 = arith.constant 0 : index
    %c0_7 = arith.constant 0 : index
    %8 = vector.load %arg6[%c0_6, %c0_7] : memref<16x256xf32, #tpu.memory_space<vmem>>, vector<16x256xf32>
    tpu.vector_store %arg6[%c0_6, %c0_7], %7 {strides = array<i32>} : memref<16x256xf32, #tpu.memory_space<vmem>>, vector<16x256xf32>,
    %c0_i32_8 = arith.constant 0 : i32
    %9 = arith.cmpi eq, %arg2, %c0_i32_8 : i32
    %10 = arith.extui %9 : i1 to i32
    %c0_i32_9 = arith.constant 0 : i32
    %11 = arith.cmpi ne, %10, %c0_i32_9 : i32
    scf.if %11 {
      %c0_10 = arith.constant 0 : index
      %c0_11 = arith.constant 0 : index
      %12 = vector.load %arg6[%c0_10, %c0_11] : memref<16x256xf32, #tpu.memory_space<vmem>>, vector<16x256xf32>
      %c0_12 = arith.constant 0 : index
      %c0_13 = arith.constant 0 : index
      %13 = vector.load %arg5[%c0_12, %c0_13] : memref<16x256xf32, #tpu.memory_space<vmem>>, vector<16x256xf32>
      tpu.vector_store %arg5[%c0_12, %c0_13], %12 {strides = array<i32>} : memref<16x256xf32, #tpu.memory_space<vmem>>, vector<16x256xf32>,
    } else {
    }
    return
  }
  func.func @transform_0(%arg0: i32, %arg1: i32, %arg2: i32) -> (i32, i32) {
    %c0_i32 = arith.constant 0 : i32
    return %arg0, %arg2 : i32, i32
  }
  func.func @transform_1(%arg0: i32, %arg1: i32, %arg2: i32) -> (i32, i32) {
    %c0_i32 = arith.constant 0 : i32
    return %arg2, %arg1 : i32, i32
  }
  func.func @transform_2(%arg0: i32, %arg1: i32, %arg2: i32) -> (i32, i32) {
    %c0_i32 = arith.constant 0 : i32
    return %arg0, %arg1 : i32, i32
  }
}

</mosaic_0001>

<bundles_post_ra>
// kernel: tpu_custom_call.1
= control target key start
LH: loop header
LB: loop body
LE: loop exit
PB: predicated region body
PF: predicated region fallthrough
CT: control target
= control target key end

     0   :  { %7 = vsyncpa [#allocation4], 0  ;;  %s967_s0 = inlined_call_operand.hbm [shape: f32[16,32], index: 0, kind: input, shape index: {}]   ;;  %s968_s1 = inlined_call_operand.hbm [shape: f32[32,1536], index: 1, kind: input, shape index: {}]   ;;  %s969_s2 = inlined_call_operand.hbm [shape: f32[16,1536], index: 2, kind: output, shape index: {}]  }
   0x1   :  { %8 = vsyncpa [#allocation7], 0 }
   0x2   :  { %10 = vsyncpa [#allocation7 + $0x1], 0 }
   0x3   :  { %11 = vsyncpa [#allocation5], 0 }
   0x4   :  { %13 = vsyncpa [#allocation5 + $0x1], 0  ;;  %s755_s9 = smov 0   ;;  %s757_s10 = smov 0  }
   0x5   :  { %s759_s11 = smov 0   ;;  %s761_s12 = smov 0  }
   0x6   :  { %s763_s13 = smov 0   ;;  %s765_s14 = smov 0  }
   0x7 LB: > { %s467_s15 = sadd.s32 4294967295, %s726_s14   ;;  %s468_s16 = sadd.s32 4294967294, %s726_s14   ;;  %s726_s14 = sphi %s765_s14, %s19_s14   ;;  %s722_s13 = sphi %s763_s13, %s994_s13   ;;  %s718_s12 = sphi %s761_s12, %s993_s12   ;;  %s714_s11 = sphi %s759_s11, %s992_s11   ;;  %s710_s10 = sphi %s757_s10, %s991_s10   ;;  %s706_s9 = sphi %s755_s9, %s990_s9  }
   0x8   : > { %p82_p0 = scmp.ne.s32.totalorder %s714_s11, %s710_s10  ;;  %p83_p1 = scmp.eq.s32.totalorder %s726_s14, 0 }
   0x9   : > { %p88_p2 = scmp.ne.s32.totalorder %s710_s10, %s706_s9  ;;  %p792_p3 = scmp.eq.s32.totalorder %s467_s15, 0 }
   0xa   : > { %p796_p4 = por %p83_p1, %p82_p0  ;;  %p114_p5 = scmp.eq.s32.totalorder %s467_s15, 5 }
   0xb   : > { %s976_s17 = scalar_select %p792_p3, 1, 0 }
   0xc   : > { %p802_p6 = por %p792_p3, %p88_p2  ;;  %p120_p7 = scmp.eq.s32.totalorder %s468_s16, 5 }
   0xd   : > { %p806_p8 = por %p114_p5, %p82_p0  ;;  %p469_p9 = scmp.ge.s32.totalorder %s726_s14, 1 }
   0xe   : > { %s978_s19 = scalar_select %p802_p6, 1, 0 }
   0xf   : > { %s979_s20 = scalar_select %p806_p8, 1, 0 }
  0x10   : > { %p811_p10 = por %p120_p7, %p88_p2  ;;  %p127_p11 = scmp.lt.s32.totalorder %s726_s14, 7 }
  0x11   : > { %s728_s23 = smov [#allocation3]   ;;  %p521_p0 = scmp.lt.s32.totalorder %s726_s14, 6 }
  0x12   : > { %s980_s21 = scalar_select %p811_p10, 1, 0 }
  0x13   : > { %p816_p12 = pnand %p469_p9, %p127_p11  ;;  %s143_s24 = sshll.u32 %s728_s23, 4  ;;  %s144_s24 = int_to_ptr.vmem [resolvable:$true] %s143_s24 }
  0x14   : > { %p831_p2 = pnand %p521_p0, %p796_p4  ;;  %s34_s27 = sadd.s32 1, %s722_s13 }
  0x15   : > { %s981_s22 = scalar_select %p816_p12, 1, 0 }
  0x16   : > { %p508_p13 = pneg %p816_p12  ;;  %s582_s30 = scalar_lea.hbm %s967_s0, 256 }
  0x17   : > { %s983_s26 = scalar_select %p831_p2, 1, 0 }
  0x18   : > { %p825_p1 = pnand %p508_p13, %p792_p3  ;;  %p583_p5 = scmp.ne.s32.totalorder %s967_s0, %s582_s30 }
  0x19   : > { %p589_p4 = scmp.lt.u32.totalorder %s582_s30, %s967_s0 }
  0x1a   : > { %p584_p7 = pneg %p825_p1 }
  0x1c   : > { %p585_p9 = pnand %p584_p7, %p583_p5 }
  0x1e   : > { %p586_p11 = pneg %p585_p9 }
  0x20   : > { %p591_p13 = pnand %p589_p4, %p586_p11 }
  0x22   : > { %594 = shalt.err (!%p591_p13)
}
  0x23   : > { %s595_s7 = scalar_lea.vmem %s144_s24, 256  ;;  %p603_p6 = scmp.lt.s32.totalorder %s144_s24, %s144_s24 }
  0x24   : > { %p596_p0 = scmp.ne.s32.totalorder %s144_s24, %s595_s7  ;;  %p604_p3 = scmp.lt.s32.totalorder %s595_s7, %s595_s7 }
  0x26   : > { %p598_p10 = pnand %p596_p0, %p584_p7  ;;  %p605_p12 = por %p604_p3, %p603_p6 }
  0x28   : > { %p599_p8 = pneg %p598_p10 }
  0x2a   : > { %p606_p2 = pnand %p605_p12, %p599_p8 }
  0x2c   : > { %609 = shalt.err (!%p606_p2)
}
  0x2d   : > { %s729_s8 = smov 128   ;;  %s730_s15 = smov 8  }
  0x2e   : > { %511 = dma.hbm_to_vmem [thread:$0]  (!%p825_p1), %s967_s0, 256, %s144_s24, [#allocation4], %s729_s8, %s729_s8, %s730_s15  }
  0x2f   : > { %p36_p5 = scmp.ge.s32.totalorder %s34_s27, 6  ;;  %s75_s23 = sadd.s32 1, %s714_s11 }
  0x30   : > { %s157_s28 = sand.u32 1, %s714_s11   ;;  %s486_s3 = sshll.u32 %s722_s13, 8 }
  0x31   : > { %s996_s27 = smov (%p36_p5, %s34_s27), 0  ;;  %s472_s29 = sshll.u32 %s157_s28, 6 }
  0x32   : > { %s71_s30 = ssub.s32 %s722_s13, %s996_s27  ;;  %s862_s25 = scalar_lea.hbm %s968_s1, %s486_s3 }
  0x33   : > { %p73_p3 = scmp.eq.s32.totalorder %s71_s30, 0  ;;  %s161_s24 = scalar_lea.vmem [#allocation6], %s472_s29 }
  0x34   : > { %s171_s6 = sshll.u32 %s161_s24, 4  ;;  %s869_s8 = scalar_lea.sflag [#allocation7], %s157_s28  ;;  %s867_s6 = int_to_ptr.vmem [resolvable:$true] %s171_s6 }
  0x35   : > { %s865_s7 = scalar_select %p73_p3, %s714_s11, %s75_s23  }
  0x36   : > { %s610_s15 = scalar_lea.hbm %s862_s25, 1024  ;;  %p984_p8 = scmp.ne.s32.totalorder %s983_s26, 0 }
  0x37   : > { %p611_p6 = scmp.ne.s32.totalorder %s862_s25, %s610_s15  ;;  %s615_s30 = scalar_lea.hbm %s968_s1, 6144 }
  0x38   : > { %p612_p10 = pneg %p984_p8  ;;  %p616_p2 = scmp.lt.u32.totalorder %s862_s25, %s968_s1 }
  0x39   : > { %p617_p7 = scmp.lt.u32.totalorder %s615_s30, %s610_s15  ;;  %p619_p11 = scmp.lt.u32.totalorder %s610_s15, %s862_s25 }
  0x3a   : > { %p613_p12 = pnand %p612_p10, %p611_p6 }
  0x3b   : > { %p618_p9 = por %p617_p7, %p616_p2 }
  0x3c   : > { %p614_p1 = pneg %p613_p12 }
  0x3d   : > { %p620_p4 = por %p619_p11, %p618_p9 }
  0x3f   : > { %p621_p13 = pnand %p620_p4, %p614_p1 }
  0x41   : > { %624 = shalt.err (!%p621_p13)
}
  0x42   : > { %s625_s23 = scalar_lea.vmem %s867_s6, 1024  ;;  %s731_s28 = smov [#allocation6]  }
  0x43   : > { %p626_p0 = scmp.ne.s32.totalorder %s867_s6, %s625_s23  ;;  %s630_s4 = sshll.u32 %s731_s28, 4  ;;  %s631_s4 = int_to_ptr.vmem [resolvable:$false] %s630_s4 }
  0x44   : > { %s632_s5 = scalar_lea.vmem %s631_s4, 2048  ;;  %p633_p6 = scmp.lt.s32.totalorder %s867_s6, %s631_s4 }
  0x45   : > { %p628_p5 = pnand %p626_p0, %p612_p10  ;;  %p634_p12 = scmp.lt.s32.totalorder %s632_s5, %s625_s23 }
  0x47   : > { %p629_p3 = pneg %p628_p5  ;;  %p635_p2 = por %p634_p12, %p633_p6 }
  0x49   : > { %p636_p7 = pnand %p635_p2, %p629_p3 }
  0x4b   : > { %639 = shalt.err (!%p636_p7)
}
  0x4c   : > { %s732_s24 = smov 1536   ;;  %s733_s15 = smov 256  }
  0x4d   : > { %s734_s16 = smov 16   ;;  %p985_p10 = scmp.ne.s32.totalorder %s981_s22, 0 }
  0x4e   : > { %515 = dma.hbm_to_vmem [thread:$0]  (!%p984_p8), %s862_s25, 1024, %s867_s6, %s869_s8, %s732_s24, %s733_s15, %s734_s16  }
  0x4f   : > { %183 = sbr.rel (%p985_p10) target bundleno = 331 (0x14b), region = 28  ;;  %p986_p1 = scmp.ne.s32.totalorder (!%p985_p10), %s976_s17, 0 }
  0x56   : > { %693 = dma.done.wait (%p986_p1), [#allocation4], 256  }
  0x57   : > { %695 = vsyncadd (%p986_p1), [#allocation4], 4294967040  ;;  %s904_s18 = sand.u32 1, %s710_s10   ;;  %p987_p9 = scmp.ne.s32.totalorder %s978_s19, 0 }
  0x58   : > { %s477_s30 = sshll.u32 %s904_s18, 6  ;;  %s190_s29 = scalar_lea.sflag [#allocation7], %s904_s18 }
  0x59   : > { %s193_s3 = scalar_lea.vmem [#allocation6], %s477_s30 }
  0x5a   : > { %697 = dma.done.wait (%p987_p9), %s190_s29, 1024  }
  0x5b   : > { %699 = vsyncadd (%p987_p9), %s190_s29, 4294966272  ;;  %v735_v0 = vmov 0.0   ;;  %v234_v1 = vld [vmem:[%s193_s3 + $0x8] sm:$0xff]  ;;  %v236_v2 = vld [vmem:[%s193_s3 + $0x18] sm:$0xff]  ;;  %vm241_vm0 = vcmask 261120   ;;  %s478_s17 = sshll.u32 %s904_s18, 5 }
  0x5c   : > { %312 = vmatprep.mubr.f32.mxu0 %v735_v0  ;;  %318 = vmatprep.mubr.f32.mxu1 %v735_v0  ;;  %v233_v3 = vld [vmem:[%s193_s3] sm:$0xff]  ;;  %v488_v4 = vpack.c.bf16 %v236_v2, %v234_v1  ;;  %v235_v5 = vld [vmem:[%s193_s3 + $0x10] sm:$0xff]  ;;  %v238_v6 = vld [vmem:[%s193_s3 + $0x28] sm:$0xff]  ;;  %s213_s19 = scalar_lea.vmem [#allocation8], %s478_s17  ;;  %s487_s26 = sshll.u32 %s718_s12, 8 }
  0x5d   : > { %v240_v7 = vld [vmem:[%s193_s3 + $0x38] sm:$0xff]  ;;  %v490_v8 = vpack.c.bf16 %v235_v5, %v233_v3  ;;  %v237_v10 = vld [vmem:[%s193_s3 + $0x20] sm:$0xff]  ;;  %v239_v11 = vld [vmem:[%s193_s3 + $0x30] sm:$0xff]  ;;  %s361_s22 = sshll.u32 %s213_s19, 4  ;;  %s919_s8 = scalar_lea.hbm %s969_s2, %s487_s26  ;;  %s914_s22 = int_to_ptr.vmem [resolvable:$true] %s361_s22 }
  0x5e   : > { %v492_v9 = vpack.c.bf16 %v240_v7, %v238_v6  ;;  %489 = vmatprep.subr.bf16.mxu0 %v488_v4  ;;  %496 = vmatprep.subr.bf16.mxu1 %v488_v4  ;;  %v494_v12 = vpack.c.bf16 %v239_v11, %v237_v10  ;;  %v231_v13 = vld [vmem:[#allocation3] sm:$0xff]  ;;  %v232_v14 = vld [vmem:[#allocation3 + $0x8] sm:$0xff]  ;;  %s345_s23 = scalar_lea.sflag [#allocation5], %s904_s18  ;;  %s640_s12 = scalar_lea.vmem %s914_s22, 512 }
  0x5f   : > { %491 = vmatpush1.bf16.msra.mxu0 %v490_v8  ;;  %498 = vmatpush1.bf16.msra.mxu1 %v490_v8  ;;  %p641_p8 = scmp.ne.s32.totalorder %s914_s22, %s640_s12  ;;  %p988_p11 = scmp.ne.s32.totalorder %s979_s20, 0 }
  0x60   : > { %493 = vmatprep.subr.bf16.mxu0 %v492_v9  ;;  %497 = vmatprep.subr.bf16.mxu1 %v492_v9  ;;  %s736_s28 = smov [#allocation8]  }
  0x61   : > { %p642_p4 = pnand %p641_p8, %p988_p11  ;;  %s644_s4 = sshll.u32 %s736_s28, 4  ;;  %s645_s4 = int_to_ptr.vmem [resolvable:$false] %s644_s4 }
  0x62   : > { %s646_s5 = scalar_lea.vmem %s645_s4, 1024  ;;  %p647_p0 = scmp.lt.s32.totalorder %s914_s22, %s645_s4 }
  0x63   : > { %495 = vmatpush1.bf16.msra.mxu0 %v494_v12  ;;  %499 = vmatpush1.bf16.msra.mxu1 %v494_v12  ;;  %p643_p13 = pneg %p642_p4  ;;  %p648_p5 = scmp.lt.s32.totalorder %s646_s5, %s640_s12 }
  0x65   : > { %p649_p3 = por %p648_p5, %p647_p0 }
  0x66   : > { %479 = vmatmul.mubr.msk.f32.vlgmr.msra.gmra.mrb[0].mxu0 %vm241_vm0, %v231_v13  ;;  %480 = vmatmul.mubr.msk.f32.vlgmr.msra.gmra.mrb[0].mxu1 %vm241_vm0, %v232_v14 }
  0x67   : > { %p650_p6 = pnand %p649_p3, %p643_p13 }
 0x139   : > { %v314_v15 = vpop.f32.mrb[0].mxu0  ;;  %v320_v16 = vpop.f32.mrb[0].mxu1 }
 0x13a   : > { %340 = vst [vmem:[%s213_s19] sm:$0xff] %v314_v15  ;;  %342 = vst [vmem:[%s213_s19 + $0x10] sm:$0xff] %v320_v16  ;;  %v316_v17 = vpop.f32.mrb[1].mxu0  ;;  %v322_v18 = vpop.f32.mrb[1].mxu1 }
 0x13b   : > { %341 = vst [vmem:[%s213_s19 + $0x8] sm:$0xff] %v316_v17  ;;  %343 = vst [vmem:[%s213_s19 + $0x18] sm:$0xff] %v322_v18 }
 0x13c   : > { %653 = shalt.err (!%p650_p6)
}
 0x13d   : > { %s654_s24 = scalar_lea.hbm %s919_s8, 512  ;;  %s658_s30 = scalar_lea.hbm %s969_s2, 3072 }
 0x13e   : > { %p655_p12 = scmp.ne.s32.totalorder %s919_s8, %s654_s24  ;;  %p659_p10 = scmp.lt.u32.totalorder %s919_s8, %s969_s2 }
 0x13f   : > { %p660_p1 = scmp.lt.u32.totalorder %s658_s30, %s654_s24  ;;  %p662_p8 = scmp.lt.u32.totalorder %s654_s24, %s919_s8 }
 0x140   : > { %p656_p2 = pnand %p655_p12, %p988_p11 }
 0x141   : > { %p661_p9 = por %p660_p1, %p659_p10 }
 0x142   : > { %p657_p7 = pneg %p656_p2 }
 0x143   : > { %p663_p4 = por %p662_p8, %p661_p9 }
 0x145   : > { %p664_p13 = pnand %p663_p4, %p657_p7 }
 0x147   : > { %667 = shalt.err (!%p664_p13)
}
 0x148   : > { %s737_s17 = smov 256   ;;  %s738_s19 = smov 1536  }
 0x149   : > { %s739_s26 = smov 16  }
 0x14a   : > { %506 = dma.vmem_to_hbm [thread:$0]  (%p988_p11), %s914_s22, 512, %s919_s8, %s345_s23, %s737_s17, %s738_s19, %s739_s26  }
 0x14b PF: > { %p523_p0 = scmp.ge.s32.totalorder %s726_s14, 2  ;;  %s376_s25 = sand.u32 1, %s706_s9  }
 0x14c   : > { %p989_p5 = scmp.ne.s32.totalorder %s980_s21, 0  ;;  %s377_s6 = scalar_lea.sflag [#allocation5], %s376_s25 }
 0x14e   : > { %p517_p3 = pnand %p523_p0, %p989_p5 }
 0x150   : > { %701 = dma.done.wait (!%p517_p3), %s377_s6, 512  }
 0x151   : > { %703 = vsyncadd (!%p517_p3), %s377_s6, 4294966784  ;;  %s19_s14 = sadd.s32 1, %s726_s14   ;;  %s990_s9 = smov %s710_s10 }
 0x152   : > { %p16_p6 = scmp.ge.s32.totalorder %s19_s14, 8   ;;  %s991_s10 = smov %s714_s11 }
 0x153   : > { %s992_s11 = smov %s865_s7  ;;  %s993_s12 = smov %s722_s13 }
 0x154   : > { %s994_s13 = smov %s996_s27  ;;  %18 = sbr.rel (!%p16_p6) target bundleno = 7 (0x7), region = 87 }
 0x15b   :  { %382 = vsyncpa [#allocation4], 1 }
 0x15c   :  { %384 = vsyncpa [#allocation4 + $0x1], 1 }
 0x15d   :  { %385 = vsyncpa [#allocation7], 1 }
 0x15e   :  { %387 = vsyncpa [#allocation7 + $0x1], 1 }
 0x15f   :  { %388 = vsyncpa [#allocation5], 1 }
 0x160   :  { %390 = vsyncpa [#allocation5 + $0x1], 1 }

</bundles_post_ra>
